<compile_context>
chip_gen: v7x
topology: tpu7x:2x2x1
jax: 0.10.0
libtpu: 0.0.40
codegen_flags: <defaults>
</compile_context>

<pallas_src>
import functools
import math

import jax
import jax.numpy as jnp
from jax.experimental import pallas as pl
from jax.experimental.pallas import tpu as pltpu


H_PAD = 128    # hidden width 64 padded to one vreg lane width (lane-dense)
O_PAD = 128    # output width 10 padded to 128 (lane-dense stores in-kernel)
TM_MAX = 512   # max rows per grid step (review: raised from 128)


def _round_up(x, m):
    return (x + m - 1) // m * m


# ----------------------------------------------------------------------------
# Pallas kernel: whole MLP fused, one M-tile per grid step
# ----------------------------------------------------------------------------

def _mlp_kernel(x_ref, w1_ref, b1_ref, w2_ref, b2_ref, w3_ref, b3_ref, o_ref):
    # Layer 1: bf16 x / bf16 W1 operands on the MXU, f32 accumulation.
    h = jnp.dot(x_ref[...], w1_ref[...],
                preferred_element_type=jnp.float32) + b1_ref[...]
    h = jnp.maximum(h, 0.0)
    # Layers 2/3 are tiny (128^2 weights); keep them f32.
    h = jnp.dot(h, w2_ref[...], preferred_element_type=jnp.float32) + b2_ref[...]
    h = jnp.maximum(h, 0.0)
    o = jnp.dot(h, w3_ref[...], preferred_element_type=jnp.float32) + b3_ref[...]
    o_ref[...] = o.astype(o_ref.dtype)


# ----------------------------------------------------------------------------
# Tile selection
# ----------------------------------------------------------------------------

def _pick_m_tile(B):
    """Return (TM, Mp): row-tile size and padded row count.

    - tiny batches (< 256 rows): single grid step (TM == Mp)
    - medium batches: split into 2 steps so the 'parallel' M axis can shard
      across v7x's two TensorCores instead of idling one of them
    - large batches: 512-row tiles (always >= 2 steps), amortizing the
      per-step overhead while staying well inside the 32 MiB scoped VMEM
      budget (bf16 x tile: 3 MiB, double-buffered 6 MiB).
    """
    Mp = _round_up(B, 8)
    if Mp >= 2 * TM_MAX:
        tm = TM_MAX
    elif Mp >= 256:
        tm = _round_up(-(-Mp // 2), 8)
    else:
        tm = Mp
    return tm, _round_up(Mp, tm)


# ----------------------------------------------------------------------------
# Wrapper
# ----------------------------------------------------------------------------

def mlp_forward(params, x, n_classes=10):
    """x: [B, ...] (any trailing shape, flattened like torch's x.view(B, -1))."""
    B = x.shape[0]
    # Stream x in bf16 — the dominant HBM read for large batches. Accumulation
    # inside the kernel stays f32 (preferred_element_type).
    xf = x.reshape(B, -1).astype(jnp.bfloat16)
    K = xf.shape[1]

    TM, Mp = _pick_m_tile(B)
    # Only materialize a padded copy when the row count actually changes
    # (avoids one full extra HBM pass over x for already-aligned batches).
    xp = xf if Mp == B else jnp.pad(xf, ((0, Mp - B), (0, 0)))

    flops = 2 * Mp * (K * H_PAD + H_PAD * H_PAD + H_PAD * O_PAD)
    bytes_accessed = (
        Mp * K * 2                               # x (bf16)
        + K * H_PAD * 2                          # W1 (bf16)
        + (H_PAD * H_PAD + H_PAD * O_PAD) * 4    # W2, W3 (f32)
        + (2 * H_PAD + O_PAD) * 4                # biases (f32)
        + Mp * O_PAD * 4)                        # lane-dense output (f32)

    out = pl.pallas_call(
        _mlp_kernel,
        out_shape=jax.ShapeDtypeStruct((Mp, O_PAD), jnp.float32),
        grid_spec=pltpu.PrefetchScalarGridSpec(
            num_scalar_prefetch=0,
            grid=(Mp // TM,),
            in_specs=[
                pl.BlockSpec((TM, K), lambda i: (i, 0)),          # x tile (bf16)
                pl.BlockSpec((K, H_PAD), lambda i: (0, 0)),       # W1 (bf16)
                pl.BlockSpec((1, H_PAD), lambda i: (0, 0)),       # b1
                pl.BlockSpec((H_PAD, H_PAD), lambda i: (0, 0)),   # W2
                pl.BlockSpec((1, H_PAD), lambda i: (0, 0)),       # b2
                pl.BlockSpec((H_PAD, O_PAD), lambda i: (0, 0)),   # W3
                pl.BlockSpec((1, O_PAD), lambda i: (0, 0)),       # b3
            ],
            out_specs=pl.BlockSpec((TM, O_PAD), lambda i: (i, 0)),
        ),
        cost_estimate=pl.CostEstimate(
            flops=flops, transcendentals=0, bytes_accessed=bytes_accessed),
        compiler_params=pltpu.CompilerParams(
            dimension_semantics=("parallel",),
            vmem_limit_bytes=32 * 1024 * 1024),
    )(xp, params["w1"], params["b1"], params["w2"], params["b2"],
      params["w3"], params["b3"])

    # Lazy slice only at the very end (single tiny copy).
    return out[:B, :n_classes]


# ----------------------------------------------------------------------------
# Parameter init (PyTorch nn.Linear default: U(-1/sqrt(fan_in), 1/sqrt(fan_in))),
# pre-padded ONCE to the lane-dense widths used inside the kernel.
# ----------------------------------------------------------------------------

def _init_linear(kw, kb, fan_in, fan_out, in_pad, out_pad, w_dtype=jnp.float32):
    lim = 1.0 / math.sqrt(fan_in)
    w = jax.random.uniform(kw, (fan_in, fan_out), minval=-lim, maxval=lim,
                           dtype=jnp.float32)
    b = jax.random.uniform(kb, (fan_out,), minval=-lim, maxval=lim,
                           dtype=jnp.float32)
    wp = jnp.pad(w, ((0, in_pad - fan_in), (0, out_pad - fan_out))).astype(w_dtype)
    bp = jnp.pad(b, ((0, out_pad - fan_out),)).reshape(1, out_pad)
    return wp, bp


def init_params(key, num_in=32 * 32 * 3, num_hid=64, num_out=10):
    k = jax.random.split(key, 6)
    # W1 (the largest weight by 24x) stored bf16 -> halves its DMA bytes and
    # its resident VMEM; the rest stay f32 (noise-sized).
    w1, b1 = _init_linear(k[0], k[1], num_in, num_hid, num_in, H_PAD,
                          w_dtype=jnp.bfloat16)
    w2, b2 = _init_linear(k[2], k[3], num_hid, num_hid, H_PAD, H_PAD)
    w3, b3 = _init_linear(k[4], k[5], num_hid, num_out, H_PAD, O_PAD)
    # Zero-padding guarantees: padded hidden lanes stay exactly 0 through the
    # ReLUs, padded output lanes stay 0 and are sliced off.
    return {"w1": w1, "b1": b1, "w2": w2, "b2": b2, "w3": w3, "b3": b3}


# ----------------------------------------------------------------------------
# Main
# ----------------------------------------------------------------------------

if __name__ == "__main__":
    key = jax.random.PRNGKey(0)
    pkey, xkey = jax.random.split(key)

    # 'CIFAR10' variant of MlpNet: num_in = 32*32*3, num_hid = 64, num_out = 10.
    params = init_params(pkey, num_in=32 * 32 * 3, num_hid=64, num_out=10)
    x = jax.random.normal(xkey, (2, 3, 32, 32), dtype=jnp.float32)  # NCHW

    fwd = jax.jit(functools.partial(mlp_forward, n_classes=10))
    out = jax.block_until_ready(fwd(params, x))

    # Pure-JAX reference using the SAME bf16 x / bf16 W1 operands and f32
    # accumulation (matches the kernel's numerics; only accumulation order may
    # differ slightly). For bit-exact f32 one would keep everything f32 and
    # pass precision=jax.lax.Precision.HIGHEST.
    xf = x.reshape(x.shape[0], -1).astype(jnp.bfloat16)
    h = jnp.maximum(
        jnp.dot(xf, params["w1"], preferred_element_type=jnp.float32)
        + params["b1"], 0.0)
    h = jnp.maximum(h @ params["w2"] + params["b2"], 0.0)
    ref = (h @ params["w3"] + params["b3"])[:, :10]

    assert out.shape == (2, 10), out.shape
    assert bool(jnp.all(jnp.isfinite(out)))
    assert bool(jnp.allclose(out, ref, atol=1e-3, rtol=1e-3)), \
        float(jnp.max(jnp.abs(out - ref)))
    print("KERNEL_OK")
</pallas_src>

<mosaic_0001>
module attributes {stable_mosaic.version = 11 : i64} {
  func.func @_mlp_kernel(%arg0: i32, %arg1: memref<8x3072xbf16, #tpu.memory_space<vmem>>, %arg2: memref<3072x128xbf16, #tpu.memory_space<vmem>>, %arg3: memref<1x128xf32, #tpu.memory_space<vmem>>, %arg4: memref<128x128xf32, #tpu.memory_space<vmem>>, %arg5: memref<1x128xf32, #tpu.memory_space<vmem>>, %arg6: memref<128x128xf32, #tpu.memory_space<vmem>>, %arg7: memref<1x128xf32, #tpu.memory_space<vmem>>, %arg8: memref<8x128xf32, #tpu.memory_space<vmem>>) attributes {dimension_semantics = [#tpu.dimension_semantics<parallel>], iteration_bounds = array<i64: 1>, scalar_prefetch = 0 : i64, scratch_operands = 0 : i64, tpu.core_type = #tpu.core_type<tc>, window_params = [{transform_indices = @transform_0, window_bounds = array<i64: 8, 3072>}, {pipeline_mode = #tpu.pipeline_mode<synchronous>, transform_indices = @transform_1, window_bounds = array<i64: 3072, 128>}, {pipeline_mode = #tpu.pipeline_mode<synchronous>, transform_indices = @transform_2, window_bounds = array<i64: 1, 128>}, {pipeline_mode = #tpu.pipeline_mode<synchronous>, transform_indices = @transform_3, window_bounds = array<i64: 128, 128>}, {pipeline_mode = #tpu.pipeline_mode<synchronous>, transform_indices = @transform_4, window_bounds = array<i64: 1, 128>}, {pipeline_mode = #tpu.pipeline_mode<synchronous>, transform_indices = @transform_5, window_bounds = array<i64: 128, 128>}, {pipeline_mode = #tpu.pipeline_mode<synchronous>, transform_indices = @transform_6, window_bounds = array<i64: 1, 128>}, {transform_indices = @transform_7, window_bounds = array<i64: 8, 128>}]} {
    %c0 = arith.constant 0 : index
    %c0_0 = arith.constant 0 : index
    %0 = vector.load %arg1[%c0, %c0_0] : memref<8x3072xbf16, #tpu.memory_space<vmem>>, vector<8x3072xbf16>
    %c0_1 = arith.constant 0 : index
    %c0_2 = arith.constant 0 : index
    %1 = vector.load %arg2[%c0_1, %c0_2] : memref<3072x128xbf16, #tpu.memory_space<vmem>>, vector<3072x128xbf16>
    %cst = arith.constant dense<0.000000e+00> : vector<8x128xf32>
    %2 = tpu.matmul %0, %1, %cst {dimension_numbers = #tpu.dot_dimension_numbers<[1], [0], [0], [1], [0, 0, 1, 1], [], []>} : vector<8x3072xbf16>, vector<3072x128xbf16>, vector<8x128xf32> -> vector<8x128xf32>
    %c0_3 = arith.constant 0 : index
    %c0_4 = arith.constant 0 : index
    %3 = vector.load %arg3[%c0_3, %c0_4] : memref<1x128xf32, #tpu.memory_space<vmem>>, vector<1x128xf32>
    %4 = vector.broadcast %3 : vector<1x128xf32> to vector<8x128xf32>
    %5 = arith.addf %2, %4 : vector<8x128xf32>
    %cst_5 = arith.constant 0.000000e+00 : f32
    %6 = vector.broadcast %cst_5 : f32 to vector<8x128xf32>
    %7 = arith.maximumf %5, %6 : vector<8x128xf32>
    %c0_6 = arith.constant 0 : index
    %c0_7 = arith.constant 0 : index
    %8 = vector.load %arg4[%c0_6, %c0_7] : memref<128x128xf32, #tpu.memory_space<vmem>>, vector<128x128xf32>
    %cst_8 = arith.constant dense<0.000000e+00> : vector<8x128xf32>
    %9 = tpu.matmul %7, %8, %cst_8 {dimension_numbers = #tpu.dot_dimension_numbers<[1], [0], [0], [1], [0, 0, 1, 1], [], []>} : vector<8x128xf32>, vector<128x128xf32>, vector<8x128xf32> -> vector<8x128xf32>
    %c0_9 = arith.constant 0 : index
    %c0_10 = arith.constant 0 : index
    %10 = vector.load %arg5[%c0_9, %c0_10] : memref<1x128xf32, #tpu.memory_space<vmem>>, vector<1x128xf32>
    %11 = vector.broadcast %10 : vector<1x128xf32> to vector<8x128xf32>
    %12 = arith.addf %9, %11 : vector<8x128xf32>
    %cst_11 = arith.constant 0.000000e+00 : f32
    %13 = vector.broadcast %cst_11 : f32 to vector<8x128xf32>
    %14 = arith.maximumf %12, %13 : vector<8x128xf32>
    %c0_12 = arith.constant 0 : index
    %c0_13 = arith.constant 0 : index
    %15 = vector.load %arg6[%c0_12, %c0_13] : memref<128x128xf32, #tpu.memory_space<vmem>>, vector<128x128xf32>
    %cst_14 = arith.constant dense<0.000000e+00> : vector<8x128xf32>
    %16 = tpu.matmul %14, %15, %cst_14 {dimension_numbers = #tpu.dot_dimension_numbers<[1], [0], [0], [1], [0, 0, 1, 1], [], []>} : vector<8x128xf32>, vector<128x128xf32>, vector<8x128xf32> -> vector<8x128xf32>
    %c0_15 = arith.constant 0 : index
    %c0_16 = arith.constant 0 : index
    %17 = vector.load %arg7[%c0_15, %c0_16] : memref<1x128xf32, #tpu.memory_space<vmem>>, vector<1x128xf32>
    %18 = vector.broadcast %17 : vector<1x128xf32> to vector<8x128xf32>
    %19 = arith.addf %16, %18 : vector<8x128xf32>
    %c0_17 = arith.constant 0 : index
    %c0_18 = arith.constant 0 : index
    %20 = vector.load %arg8[%c0_17, %c0_18] : memref<8x128xf32, #tpu.memory_space<vmem>>, vector<8x128xf32>
    tpu.vector_store %arg8[%c0_17, %c0_18], %19 {strides = array<i32>} : memref<8x128xf32, #tpu.memory_space<vmem>>, vector<8x128xf32>,
    return
  }
  func.func @transform_0(%arg0: i32) -> (i32, i32) {
    %c0_i32 = arith.constant 0 : i32
    %c0_i32_0 = arith.constant 0 : i32
    return %arg0, %c0_i32 : i32, i32
  }
  func.func @transform_1(%arg0: i32) -> (i32, i32) {
    %c0_i32 = arith.constant 0 : i32
    %c0_i32_0 = arith.constant 0 : i32
    %c0_i32_1 = arith.constant 0 : i32
    return %c0_i32, %c0_i32_0 : i32, i32
  }
  func.func @transform_2(%arg0: i32) -> (i32, i32) {
    %c0_i32 = arith.constant 0 : i32
    %c0_i32_0 = arith.constant 0 : i32
    %c0_i32_1 = arith.constant 0 : i32
    return %c0_i32, %c0_i32_0 : i32, i32
  }
  func.func @transform_3(%arg0: i32) -> (i32, i32) {
    %c0_i32 = arith.constant 0 : i32
    %c0_i32_0 = arith.constant 0 : i32
    %c0_i32_1 = arith.constant 0 : i32
    return %c0_i32, %c0_i32_0 : i32, i32
  }
  func.func @transform_4(%arg0: i32) -> (i32, i32) {
    %c0_i32 = arith.constant 0 : i32
    %c0_i32_0 = arith.constant 0 : i32
    %c0_i32_1 = arith.constant 0 : i32
    return %c0_i32, %c0_i32_0 : i32, i32
  }
  func.func @transform_5(%arg0: i32) -> (i32, i32) {
    %c0_i32 = arith.constant 0 : i32
    %c0_i32_0 = arith.constant 0 : i32
    %c0_i32_1 = arith.constant 0 : i32
    return %c0_i32, %c0_i32_0 : i32, i32
  }
  func.func @transform_6(%arg0: i32) -> (i32, i32) {
    %c0_i32 = arith.constant 0 : i32
    %c0_i32_0 = arith.constant 0 : i32
    %c0_i32_1 = arith.constant 0 : i32
    return %c0_i32, %c0_i32_0 : i32, i32
  }
  func.func @transform_7(%arg0: i32) -> (i32, i32) {
    %c0_i32 = arith.constant 0 : i32
    %c0_i32_0 = arith.constant 0 : i32
    return %arg0, %c0_i32 : i32, i32
  }
}

</mosaic_0001>

<bundles_post_ra>
// kernel: mlp_forward.1
= control target key start
LH: loop header
LB: loop body
LE: loop exit
PB: predicated region body
PF: predicated region fallthrough
CT: control target
= control target key end

     0   :  { %12 = vsyncpa [#allocation3], 0  ;;  %s3235_s24 = smov [#allocation2]   ;;  %s3453_s0 = inlined_call_operand.vmem [shape: bf16[8,3072], index: 0, kind: input, shape index: {}]   ;;  %s3454_s1 = inlined_call_operand.hbm [shape: bf16[3072,128], index: 1, kind: input, shape index: {}]   ;;  %s3455_s2 = inlined_call_operand.vmem [shape: f32[1,128], index: 2, kind: input, shape index: {}]   ;;  %s3456_s3 = inlined_call_operand.vmem [shape: f32[128,128], index: 3, kind: input, shape index: {}]   ;;  %s3457_s4 = inlined_call_operand.vmem [shape: f32[1,128], index: 4, kind: input, shape index: {}]   ;;  %s3458_s5 = inlined_call_operand.vmem [shape: f32[128,128], index: 5, kind: input, shape index: {}]   ;;  %s3459_s6 = inlined_call_operand.vmem [shape: f32[1,128], index: 6, kind: input, shape index: {}]   ;;  %s3460_s7 = inlined_call_operand.vmem [shape: f32[8,128], index: 7, kind: output, shape index: {}]  }
   0x1   :  { %s20_s25 = sshll.u32 %s3235_s24, 4  ;;  %s3211_s28 = scalar_lea.hbm %s3454_s1, 24576  ;;  %s21_s25 = int_to_ptr.vmem [resolvable:$true] %s20_s25 }
   0x2   :  { %p3212_p0 = scmp.ne.s32.totalorder %s3454_s1, %s3211_s28  ;;  %p3215_p1 = scmp.lt.u32.totalorder %s3211_s28, %s3454_s1 }
   0x4   :  { %p3217_p2 = pnand %p3215_p1, %p3212_p0 }
   0x6   :  { %3220 = shalt.err (!%p3217_p2)
}
   0x7   :  { %s3221_s10 = scalar_lea.vmem %s21_s25, 24576  ;;  %p3226_p4 = scmp.lt.s32.totalorder %s21_s25, %s21_s25 }
   0x8   :  { %p3222_p3 = scmp.ne.s32.totalorder %s21_s25, %s3221_s10  ;;  %p3227_p5 = scmp.lt.s32.totalorder %s3221_s10, %s3221_s10 }
   0xa   :  { %p3228_p6 = por %p3227_p5, %p3226_p4 }
   0xc   :  { %p3229_p7 = pnand %p3228_p6, %p3222_p3 }
   0xe   :  { %3232 = shalt.err (!%p3229_p7)
}
   0xf   :  { %s3236_s11 = smov 64   ;;  %s3237_s12 = smov 4  }
  0x10   :  { %26 = dma.hbm_to_vmem [thread:$0]  %s3454_s1, 24576, %s21_s25, [#allocation3], %s3236_s11, %s3236_s11, %s3237_s12  }
  0x11   :  { %3233 = dma.done.wait [#allocation3], 24576  }
  0x12   :  { %3234 = vsyncadd [#allocation3], 4294942720  ;;  %v2995_v0 = vld [vmem:[#allocation2 + $0x40] sm:$0xff]   ;;  %v2999_v4 = vld [vmem:[#allocation2 + $0x48] sm:$0xff]   ;;  %vm3239_vm0 = vmmov 0  }
  0x13   :  { %v2996_v1 = vld [vmem:[#allocation2 + $0xc0] sm:$0xff]   ;;  %2573 = vmatprep.subr.bf16.mxu0 %v2995_v0  ;;  %v3000_v5 = vld [vmem:[#allocation2 + $0xc8] sm:$0xff]   ;;  %v3003_v8 = vld [vmem:[#allocation2 + $0x50] sm:$0xff]  }
  0x14   :  { %v2997_v2 = vld [vmem:[#allocation2] sm:$0xff]   ;;  %2595 = vmatprep.subr.bf16.mxu1 %v2996_v1  ;;  %v3001_v6 = vld [vmem:[#allocation2 + $0x8] sm:$0xff]   ;;  %v3004_v9 = vld [vmem:[#allocation2 + $0xd0] sm:$0xff]  }
  0x15   :  { %v2998_v3 = vld [vmem:[#allocation2 + $0x80] sm:$0xff]   ;;  %2574 = vmatpush3.bf16.msra.mxu0 %v2997_v2  ;;  %v3002_v7 = vld [vmem:[#allocation2 + $0x88] sm:$0xff]   ;;  %v3005_v10 = vld [vmem:[#allocation2 + $0x10] sm:$0xff]  }
  0x16   :  { %2596 = vmatpush3.bf16.msra.mxu1 %v2998_v3  ;;  %2575 = vmatprep.subr.bf16.mxu0 %v2999_v4  ;;  %v3006_v11 = vld [vmem:[#allocation2 + $0x90] sm:$0xff]   ;;  %v3007_v12 = vld [vmem:[#allocation2 + $0x58] sm:$0xff]   ;;  %v3011_v16 = vld [vmem:[#allocation2 + $0x60] sm:$0xff]  }
  0x17   :  { %2597 = vmatprep.subr.bf16.mxu1 %v3000_v5  ;;  %v3008_v13 = vld [vmem:[#allocation2 + $0xd8] sm:$0xff]   ;;  %v3012_v17 = vld [vmem:[#allocation2 + $0xe0] sm:$0xff]   ;;  %v3015_v20 = vld [vmem:[#allocation2 + $0x68] sm:$0xff]  }
  0x18   :  { %v3009_v14 = vld [vmem:[#allocation2 + $0x18] sm:$0xff]   ;;  %v3013_v18 = vld [vmem:[#allocation2 + $0x20] sm:$0xff]   ;;  %v3016_v21 = vld [vmem:[#allocation2 + $0xe8] sm:$0xff]  }
  0x19   :  { %2576 = vmatpush3.bf16.msra.mxu0 %v3001_v6  ;;  %v3010_v15 = vld [vmem:[#allocation2 + $0x98] sm:$0xff]   ;;  %v3014_v19 = vld [vmem:[#allocation2 + $0xa0] sm:$0xff]   ;;  %v3017_v22 = vld [vmem:[#allocation2 + $0x28] sm:$0xff]  }
  0x1a   :  { %2598 = vmatpush3.bf16.msra.mxu1 %v3002_v7  ;;  %2577 = vmatprep.subr.bf16.mxu0 %v3003_v8  ;;  %v3018_v23 = vld [vmem:[#allocation2 + $0xa8] sm:$0xff]   ;;  %v3019_v24 = vld [vmem:[#allocation2 + $0x70] sm:$0xff]   ;;  %v3023_v28 = vld [vmem:[#allocation2 + $0x78] sm:$0xff]  }
  0x1b   :  { %2599 = vmatprep.subr.bf16.mxu1 %v3004_v9  ;;  %v3020_v25 = vld [vmem:[#allocation2 + $0xf0] sm:$0xff]   ;;  %v3024_v29 = vld [vmem:[#allocation2 + $0xf8] sm:$0xff]   ;;  %v41_v32 = vld [vmem:[%s3453_s0] sm:$0xff] }
  0x1c   :  { %v3021_v26 = vld [vmem:[#allocation2 + $0x30] sm:$0xff]   ;;  %v3025_v30 = vld [vmem:[#allocation2 + $0x38] sm:$0xff]   ;;  %v42_v33 = vld [vmem:[%s3453_s0 + $0x8] sm:$0xff]  ;;  %v2355_v34 = vcombine.low %v41_v32, %v41_v32  ;;  %v2356_v35 = vcombine.high %v41_v32, %v41_v32 }
  0x1d   :  { %2578 = vmatpush3.bf16.msra.mxu0 %v3005_v10  ;;  %v3022_v27 = vld [vmem:[#allocation2 + $0xb0] sm:$0xff]   ;;  %v3026_v31 = vld [vmem:[#allocation2 + $0xb8] sm:$0xff]   ;;  %v2357_v36 = vcombine.low %v42_v33, %v42_v33  ;;  %v2358_v37 = vcombine.high %v42_v33, %v42_v33  ;;  %v3031_v38 = vld [vmem:[#allocation2 + $0x140] sm:$0xff]  }
  0x1e   :  { %2600 = vmatpush3.bf16.msra.mxu1 %v3006_v11  ;;  %2579 = vmatprep.subr.bf16.mxu0 %v3007_v12  ;;  %v3032_v39 = vld [vmem:[#allocation2 + $0x1c0] sm:$0xff]   ;;  %v3035_v42 = vld [vmem:[#allocation2 + $0x148] sm:$0xff]   ;;  %v3039_v46 = vld [vmem:[#allocation2 + $0x150] sm:$0xff]  }
  0x1f   :  { %2601 = vmatprep.subr.bf16.mxu1 %v3008_v13  ;;  %1712 = vmatprep.mubr.bf16.mxu0 %v2356_v35  ;;  %v3033_v40 = vld [vmem:[#allocation2 + $0x100] sm:$0xff]   ;;  %v3036_v43 = vld [vmem:[#allocation2 + $0x1c8] sm:$0xff]   ;;  %v3040_v47 = vld [vmem:[#allocation2 + $0x1d0] sm:$0xff]  }
  0x20   :  { %1752 = vmatprep.mubr.bf16.mxu1 %v2358_v37  ;;  %v3034_v41 = vld [vmem:[#allocation2 + $0x180] sm:$0xff]   ;;  %v3037_v44 = vld [vmem:[#allocation2 + $0x108] sm:$0xff]   ;;  %v3041_v48 = vld [vmem:[#allocation2 + $0x110] sm:$0xff]  }
  0x21   :  { %2580 = vmatpush3.bf16.msra.mxu0 %v3009_v14  ;;  %v3038_v45 = vld [vmem:[#allocation2 + $0x188] sm:$0xff]   ;;  %v3042_v49 = vld [vmem:[#allocation2 + $0x190] sm:$0xff]   ;;  %v3043_v50 = vld [vmem:[#allocation2 + $0x158] sm:$0xff]  }
  0x22   :  { %2602 = vmatpush3.bf16.msra.mxu1 %v3010_v15  ;;  %2581 = vmatprep.subr.bf16.mxu0 %v3011_v16  ;;  %v3044_v51 = vld [vmem:[#allocation2 + $0x1d8] sm:$0xff]   ;;  %v3047_v54 = vld [vmem:[#allocation2 + $0x160] sm:$0xff]   ;;  %v3051_v58 = vld [vmem:[#allocation2 + $0x168] sm:$0xff]  }
  0x23   :  { %2603 = vmatprep.subr.bf16.mxu1 %v3012_v17  ;;  %v3045_v52 = vld [vmem:[#allocation2 + $0x118] sm:$0xff]   ;;  %v3048_v55 = vld [vmem:[#allocation2 + $0x1e0] sm:$0xff]   ;;  %v3052_v59 = vld [vmem:[#allocation2 + $0x1e8] sm:$0xff]  }
  0x24   :  { %v3046_v53 = vld [vmem:[#allocation2 + $0x198] sm:$0xff]   ;;  %v3049_v56 = vld [vmem:[#allocation2 + $0x120] sm:$0xff]   ;;  %v3053_v60 = vld [vmem:[#allocation2 + $0x128] sm:$0xff]  }
  0x25   :  { %2582 = vmatpush3.bf16.msra.mxu0 %v3013_v18  ;;  %v3050_v57 = vld [vmem:[#allocation2 + $0x1a0] sm:$0xff]   ;;  %v3054_v61 = vld [vmem:[#allocation2 + $0x1a8] sm:$0xff]   ;;  %v3055_v62 = vld [vmem:[#allocation2 + $0x170] sm:$0xff]  }
  0x26   :  { %2604 = vmatpush3.bf16.msra.mxu1 %v3014_v19  ;;  %2583 = vmatprep.subr.bf16.mxu0 %v3015_v20  ;;  %v3056_v63 = vld [vmem:[#allocation2 + $0x1f0] sm:$0xff]   ;;  %v3059_v2 = vld [vmem:[#allocation2 + $0x178] sm:$0xff]   ;;  %v3067_v12 = vld [vmem:[#allocation2 + $0x240] sm:$0xff]  }
  0x27   :  { %2605 = vmatprep.subr.bf16.mxu1 %v3016_v21  ;;  %v3057_v0 = vld [vmem:[#allocation2 + $0x130] sm:$0xff]   ;;  %v3060_v3 = vld [vmem:[#allocation2 + $0x1f8] sm:$0xff]   ;;  %v3068_v13 = vld [vmem:[#allocation2 + $0x2c0] sm:$0xff]  }
  0x28   :  { %v3058_v1 = vld [vmem:[#allocation2 + $0x1b0] sm:$0xff]   ;;  %v3061_v4 = vld [vmem:[#allocation2 + $0x138] sm:$0xff]   ;;  %v3069_v14 = vld [vmem:[#allocation2 + $0x200] sm:$0xff]  }
  0x29   :  { %2584 = vmatpush3.bf16.msra.mxu0 %v3017_v22  ;;  %v3062_v5 = vld [vmem:[#allocation2 + $0x1b8] sm:$0xff]   ;;  %v43_v6 = vld [vmem:[%s3453_s0 + $0x10] sm:$0xff]  ;;  %v3070_v15 = vld [vmem:[#allocation2 + $0x280] sm:$0xff]  }
  0x2a   :  { %2606 = vmatpush3.bf16.msra.mxu1 %v3018_v23  ;;  %2585 = vmatprep.subr.bf16.mxu0 %v3019_v24  ;;  %v2359_v7 = vcombine.low %v43_v6, %v43_v6  ;;  %v2360_v8 = vcombine.high %v43_v6, %v43_v6  ;;  %v44_v9 = vld [vmem:[%s3453_s0 + $0x18] sm:$0xff]  ;;  %v3071_v16 = vld [vmem:[#allocation2 + $0x248] sm:$0xff]   ;;  %v3075_v20 = vld [vmem:[#allocation2 + $0x250] sm:$0xff]  }
  0x2b   :  { %2607 = vmatprep.subr.bf16.mxu1 %v3020_v25  ;;  %v2361_v10 = vcombine.low %v44_v9, %v44_v9  ;;  %v2362_v11 = vcombine.high %v44_v9, %v44_v9  ;;  %v3072_v17 = vld [vmem:[#allocation2 + $0x2c8] sm:$0xff]   ;;  %v3076_v21 = vld [vmem:[#allocation2 + $0x2d0] sm:$0xff]   ;;  %v3079_v24 = vld [vmem:[#allocation2 + $0x258] sm:$0xff]  }
  0x2c   :  { %v3073_v18 = vld [vmem:[#allocation2 + $0x208] sm:$0xff]   ;;  %v3077_v22 = vld [vmem:[#allocation2 + $0x210] sm:$0xff]   ;;  %v3080_v25 = vld [vmem:[#allocation2 + $0x2d8] sm:$0xff]  }
  0x2d   :  { %2586 = vmatpush3.bf16.msra.mxu0 %v3021_v26  ;;  %v3074_v19 = vld [vmem:[#allocation2 + $0x288] sm:$0xff]   ;;  %v3078_v23 = vld [vmem:[#allocation2 + $0x290] sm:$0xff]   ;;  %v3081_v26 = vld [vmem:[#allocation2 + $0x218] sm:$0xff]  }
  0x2e   :  { %2608 = vmatpush3.bf16.msra.mxu1 %v3022_v27  ;;  %2587 = vmatprep.subr.bf16.mxu0 %v3023_v28  ;;  %v3082_v27 = vld [vmem:[#allocation2 + $0x298] sm:$0xff]   ;;  %v3083_v28 = vld [vmem:[#allocation2 + $0x260] sm:$0xff]   ;;  %v3087_v32 = vld [vmem:[#allocation2 + $0x268] sm:$0xff]  }
  0x2f   :  { %2609 = vmatprep.subr.bf16.mxu1 %v3024_v29  ;;  %v3084_v29 = vld [vmem:[#allocation2 + $0x2e0] sm:$0xff]   ;;  %v3088_v33 = vld [vmem:[#allocation2 + $0x2e8] sm:$0xff]   ;;  %v3092_v37 = vld [vmem:[#allocation2 + $0x2f0] sm:$0xff]  }
  0x30   :  { %v3090_v35 = vld [vmem:[#allocation2 + $0x2a8] sm:$0xff]  }
  0x31   :  { %2588 = vmatpush3.bf16.msra.mxu0 %v3025_v30  ;;  %v3085_v30 = vld [vmem:[#allocation2 + $0x220] sm:$0xff]   ;;  %v3123_v6 = vld [vmem:[#allocation2 + $0x368] sm:$0xff]  }
  0x32   :  { %2610 = vmatpush3.bf16.msra.mxu1 %v3026_v31  ;;  %2617 = vmatprep.subr.bf16.mxu0 %v3031_v38  ;;  %v3086_v31 = vld [vmem:[#allocation2 + $0x2a0] sm:$0xff]   ;;  %v3093_v38 = vld [vmem:[#allocation2 + $0x230] sm:$0xff]   ;;  %v3126_v9 = vld [vmem:[#allocation2 + $0x3a8] sm:$0xff]  }
  0x33   :  { %2639 = vmatprep.subr.bf16.mxu1 %v3032_v39  ;;  %v3094_v39 = vld [vmem:[#allocation2 + $0x2b0] sm:$0xff]  }
  0x34   :  { %1713 = vmatmul.mubr.bf16.vlgmr.msra.gmra.mrb[0].mxu0 %v2355_v34  ;;  %v3089_v34 = vld [vmem:[#allocation2 + $0x228] sm:$0xff]  }
  0x35   :  { %1753 = vmatmul.mubr.bf16.vlgmr.msra.gmra.mrb[0].mxu1 %v2357_v36  ;;  %2618 = vmatpush3.bf16.msra.mxu0 %v3033_v40  ;;  %v3091_v36 = vld [vmem:[#allocation2 + $0x270] sm:$0xff]   ;;  %v3095_v40 = vld [vmem:[#allocation2 + $0x278] sm:$0xff]  }
  0x36   :  { %2640 = vmatpush3.bf16.msra.mxu1 %v3034_v41  ;;  %2619 = vmatprep.subr.bf16.mxu0 %v3035_v42  ;;  %v3096_v41 = vld [vmem:[#allocation2 + $0x2f8] sm:$0xff]  }
  0x37   :  { %2641 = vmatprep.subr.bf16.mxu1 %v3036_v43  ;;  %1792 = vmatprep.mubr.bf16.mxu0 %v2360_v8  ;;  %v3097_v42 = vld [vmem:[#allocation2 + $0x238] sm:$0xff]   ;;  %v3125_v8 = vld [vmem:[#allocation2 + $0x328] sm:$0xff]  }
  0x38   :  { %1832 = vmatprep.mubr.bf16.mxu1 %v2362_v11  ;;  %v3098_v43 = vld [vmem:[#allocation2 + $0x2b8] sm:$0xff]   ;;  %v3128_v11 = vld [vmem:[#allocation2 + $0x3f0] sm:$0xff]  }
  0x39   :  { %2620 = vmatpush3.bf16.msra.mxu0 %v3037_v44  ;;  %v45_v44 = vld [vmem:[%s3453_s0 + $0x20] sm:$0xff] }
  0x3a   :  { %2642 = vmatpush3.bf16.msra.mxu1 %v3038_v45  ;;  %2621 = vmatprep.subr.bf16.mxu0 %v3039_v46  ;;  %v46_v45 = vld [vmem:[%s3453_s0 + $0x28] sm:$0xff]  ;;  %v2363_v46 = vcombine.low %v45_v44, %v45_v44 }
  0x3b   :  { %2643 = vmatprep.subr.bf16.mxu1 %v3040_v47  ;;  %v2364_v47 = vcombine.high %v45_v44, %v45_v44  ;;  %v3159_v44 = vld [vmem:[#allocation2 + $0x468] sm:$0xff]  }
  0x3d   :  { %2622 = vmatpush3.bf16.msra.mxu0 %v3041_v48  ;;  %v2365_v48 = vcombine.low %v46_v45, %v46_v45 }
  0x3e   :  { %2644 = vmatpush3.bf16.msra.mxu1 %v3042_v49  ;;  %2623 = vmatprep.subr.bf16.mxu0 %v3043_v50  ;;  %v2366_v49 = vcombine.high %v46_v45, %v46_v45  ;;  %v3103_v50 = vld [vmem:[#allocation2 + $0x340] sm:$0xff]   ;;  %v3160_v45 = vld [vmem:[#allocation2 + $0x4e8] sm:$0xff]  }
  0x3f   :  { %2645 = vmatprep.subr.bf16.mxu1 %v3044_v51  ;;  %v3104_v51 = vld [vmem:[#allocation2 + $0x3c0] sm:$0xff]  }
  0x41   :  { %2624 = vmatpush3.bf16.msra.mxu0 %v3045_v52  ;;  %v3105_v52 = vld [vmem:[#allocation2 + $0x300] sm:$0xff]  }
  0x42   :  { %2646 = vmatpush3.bf16.msra.mxu1 %v3046_v53  ;;  %2625 = vmatprep.subr.bf16.mxu0 %v3047_v54  ;;  %v3106_v53 = vld [vmem:[#allocation2 + $0x380] sm:$0xff]   ;;  %v3107_v54 = vld [vmem:[#allocation2 + $0x348] sm:$0xff]  }
  0x43   :  { %2647 = vmatprep.subr.bf16.mxu1 %v3048_v55  ;;  %v3108_v55 = vld [vmem:[#allocation2 + $0x3c8] sm:$0xff]  }
  0x45   :  { %2626 = vmatpush3.bf16.msra.mxu0 %v3049_v56  ;;  %v3109_v56 = vld [vmem:[#allocation2 + $0x308] sm:$0xff]  }
  0x46   :  { %2648 = vmatpush3.bf16.msra.mxu1 %v3050_v57  ;;  %2627 = vmatprep.subr.bf16.mxu0 %v3051_v58  ;;  %v3110_v57 = vld [vmem:[#allocation2 + $0x388] sm:$0xff]   ;;  %v3111_v58 = vld [vmem:[#allocation2 + $0x350] sm:$0xff]  }
  0x47   :  { %2649 = vmatprep.subr.bf16.mxu1 %v3052_v59  ;;  %v3112_v59 = vld [vmem:[#allocation2 + $0x3d0] sm:$0xff]  }
  0x49   :  { %2628 = vmatpush3.bf16.msra.mxu0 %v3053_v60  ;;  %v3113_v60 = vld [vmem:[#allocation2 + $0x310] sm:$0xff]  }
  0x4a   :  { %2650 = vmatpush3.bf16.msra.mxu1 %v3054_v61  ;;  %2629 = vmatprep.subr.bf16.mxu0 %v3055_v62  ;;  %v3114_v61 = vld [vmem:[#allocation2 + $0x390] sm:$0xff]   ;;  %v3115_v62 = vld [vmem:[#allocation2 + $0x358] sm:$0xff]  }
  0x4b   :  { %2651 = vmatprep.subr.bf16.mxu1 %v3056_v63  ;;  %v3116_v63 = vld [vmem:[#allocation2 + $0x3d8] sm:$0xff]  }
  0x4d   :  { %2630 = vmatpush3.bf16.msra.mxu0 %v3057_v0  ;;  %v3117_v0 = vld [vmem:[#allocation2 + $0x318] sm:$0xff]  }
  0x4e   :  { %2652 = vmatpush3.bf16.msra.mxu1 %v3058_v1  ;;  %2631 = vmatprep.subr.bf16.mxu0 %v3059_v2  ;;  %v3118_v1 = vld [vmem:[#allocation2 + $0x398] sm:$0xff]   ;;  %v3119_v2 = vld [vmem:[#allocation2 + $0x360] sm:$0xff]  }
  0x4f   :  { %2653 = vmatprep.subr.bf16.mxu1 %v3060_v3  ;;  %v3120_v3 = vld [vmem:[#allocation2 + $0x3e0] sm:$0xff]  }
  0x51   :  { %2632 = vmatpush3.bf16.msra.mxu0 %v3061_v4  ;;  %v3121_v4 = vld [vmem:[#allocation2 + $0x320] sm:$0xff]  }
  0x52   :  { %2654 = vmatpush3.bf16.msra.mxu1 %v3062_v5  ;;  %2661 = vmatprep.subr.bf16.mxu0 %v3067_v12  ;;  %v3122_v5 = vld [vmem:[#allocation2 + $0x3a0] sm:$0xff]   ;;  %v3129_v12 = vld [vmem:[#allocation2 + $0x330] sm:$0xff]  }
  0x53   :  { %2683 = vmatprep.subr.bf16.mxu1 %v3068_v13  ;;  %v3130_v13 = vld [vmem:[#allocation2 + $0x3b0] sm:$0xff]  }
  0x54   :  { %1793 = vmatmul.mubr.bf16.vlgmr.msra.gmra.mrb[4].mxu0 %v2359_v7  ;;  %v3124_v7 = vld [vmem:[#allocation2 + $0x3e8] sm:$0xff]  }
  0x55   :  { %1833 = vmatmul.mubr.bf16.vlgmr.msra.gmra.mrb[4].mxu1 %v2361_v10  ;;  %2662 = vmatpush3.bf16.msra.mxu0 %v3069_v14  ;;  %v3127_v10 = vld [vmem:[#allocation2 + $0x370] sm:$0xff]   ;;  %v3131_v14 = vld [vmem:[#allocation2 + $0x378] sm:$0xff]  }
  0x56   :  { %2684 = vmatpush3.bf16.msra.mxu1 %v3070_v15  ;;  %2663 = vmatprep.subr.bf16.mxu0 %v3071_v16  ;;  %v3132_v15 = vld [vmem:[#allocation2 + $0x3f8] sm:$0xff]  }
  0x57   :  { %2685 = vmatprep.subr.bf16.mxu1 %v3072_v17  ;;  %1872 = vmatprep.mubr.bf16.mxu0 %v2364_v47  ;;  %v3133_v16 = vld [vmem:[#allocation2 + $0x338] sm:$0xff]   ;;  %v3162_v47 = vld [vmem:[#allocation2 + $0x4a8] sm:$0xff]  }
  0x58   :  { %1912 = vmatprep.mubr.bf16.mxu1 %v2366_v49  ;;  %v3134_v17 = vld [vmem:[#allocation2 + $0x3b8] sm:$0xff]   ;;  %v3164_v49 = vld [vmem:[#allocation2 + $0x4f0] sm:$0xff]  }
  0x59   :  { %2664 = vmatpush3.bf16.msra.mxu0 %v3073_v18  ;;  %v47_v18 = vld [vmem:[%s3453_s0 + $0x30] sm:$0xff] }
  0x5a   :  { %2686 = vmatpush3.bf16.msra.mxu1 %v3074_v19  ;;  %2665 = vmatprep.subr.bf16.mxu0 %v3075_v20  ;;  %v48_v19 = vld [vmem:[%s3453_s0 + $0x38] sm:$0xff]  ;;  %v2367_v20 = vcombine.low %v47_v18, %v47_v18 }
  0x5b   :  { %2687 = vmatprep.subr.bf16.mxu1 %v3076_v21  ;;  %v2368_v21 = vcombine.high %v47_v18, %v47_v18  ;;  %v3195_v18 = vld [vmem:[#allocation2 + $0x568] sm:$0xff]  }
  0x5d   :  { %2666 = vmatpush3.bf16.msra.mxu0 %v3077_v22  ;;  %v2369_v22 = vcombine.low %v48_v19, %v48_v19 }
  0x5e   :  { %2688 = vmatpush3.bf16.msra.mxu1 %v3078_v23  ;;  %2667 = vmatprep.subr.bf16.mxu0 %v3079_v24  ;;  %v3139_v23 = vld [vmem:[#allocation2 + $0x440] sm:$0xff]   ;;  %v2370_v24 = vcombine.high %v48_v19, %v48_v19  ;;  %v3196_v19 = vld [vmem:[#allocation2 + $0x5e8] sm:$0xff]  }
  0x5f   :  { %2689 = vmatprep.subr.bf16.mxu1 %v3080_v25  ;;  %v3140_v25 = vld [vmem:[#allocation2 + $0x4c0] sm:$0xff]  }
  0x61   :  { %2668 = vmatpush3.bf16.msra.mxu0 %v3081_v26  ;;  %v3141_v26 = vld [vmem:[#allocation2 + $0x400] sm:$0xff]  }
  0x62   :  { %2690 = vmatpush3.bf16.msra.mxu1 %v3082_v27  ;;  %2669 = vmatprep.subr.bf16.mxu0 %v3083_v28  ;;  %v3142_v27 = vld [vmem:[#allocation2 + $0x480] sm:$0xff]   ;;  %v3143_v28 = vld [vmem:[#allocation2 + $0x448] sm:$0xff]  }
  0x63   :  { %2691 = vmatprep.subr.bf16.mxu1 %v3084_v29  ;;  %v3144_v29 = vld [vmem:[#allocation2 + $0x4c8] sm:$0xff]  }
  0x65   :  { %2670 = vmatpush3.bf16.msra.mxu0 %v3085_v30  ;;  %v3145_v30 = vld [vmem:[#allocation2 + $0x408] sm:$0xff]  }
  0x66   :  { %2692 = vmatpush3.bf16.msra.mxu1 %v3086_v31  ;;  %2671 = vmatprep.subr.bf16.mxu0 %v3087_v32  ;;  %v3146_v31 = vld [vmem:[#allocation2 + $0x488] sm:$0xff]   ;;  %v3147_v32 = vld [vmem:[#allocation2 + $0x450] sm:$0xff]  }
  0x67   :  { %2693 = vmatprep.subr.bf16.mxu1 %v3088_v33  ;;  %v3148_v33 = vld [vmem:[#allocation2 + $0x4d0] sm:$0xff]  }
  0x69   :  { %2672 = vmatpush3.bf16.msra.mxu0 %v3089_v34  ;;  %v3149_v34 = vld [vmem:[#allocation2 + $0x410] sm:$0xff]  }
  0x6a   :  { %2694 = vmatpush3.bf16.msra.mxu1 %v3090_v35  ;;  %2673 = vmatprep.subr.bf16.mxu0 %v3091_v36  ;;  %v3150_v35 = vld [vmem:[#allocation2 + $0x490] sm:$0xff]   ;;  %v3151_v36 = vld [vmem:[#allocation2 + $0x458] sm:$0xff]  }
  0x6b   :  { %2695 = vmatprep.subr.bf16.mxu1 %v3092_v37  ;;  %v3152_v37 = vld [vmem:[#allocation2 + $0x4d8] sm:$0xff]  }
  0x6d   :  { %2674 = vmatpush3.bf16.msra.mxu0 %v3093_v38  ;;  %v3153_v38 = vld [vmem:[#allocation2 + $0x418] sm:$0xff]  }
  0x6e   :  { %2696 = vmatpush3.bf16.msra.mxu1 %v3094_v39  ;;  %2675 = vmatprep.subr.bf16.mxu0 %v3095_v40  ;;  %v3154_v39 = vld [vmem:[#allocation2 + $0x498] sm:$0xff]   ;;  %v3155_v40 = vld [vmem:[#allocation2 + $0x460] sm:$0xff]  }
  0x6f   :  { %2697 = vmatprep.subr.bf16.mxu1 %v3096_v41  ;;  %v3156_v41 = vld [vmem:[#allocation2 + $0x4e0] sm:$0xff]  }
  0x71   :  { %2676 = vmatpush3.bf16.msra.mxu0 %v3097_v42  ;;  %v3157_v42 = vld [vmem:[#allocation2 + $0x420] sm:$0xff]  }
  0x72   :  { %2698 = vmatpush3.bf16.msra.mxu1 %v3098_v43  ;;  %2705 = vmatprep.subr.bf16.mxu0 %v3103_v50  ;;  %v3158_v43 = vld [vmem:[#allocation2 + $0x4a0] sm:$0xff]   ;;  %v3165_v50 = vld [vmem:[#allocation2 + $0x430] sm:$0xff]  }
  0x73   :  { %2727 = vmatprep.subr.bf16.mxu1 %v3104_v51  ;;  %v3166_v51 = vld [vmem:[#allocation2 + $0x4b0] sm:$0xff]  }
  0x74   :  { %1873 = vmatmul.mubr.bf16.vlgmr.msra.gmra.mrb[8].mxu0 %v2363_v46  ;;  %v3161_v46 = vld [vmem:[#allocation2 + $0x428] sm:$0xff]  }
  0x75   :  { %1913 = vmatmul.mubr.bf16.vlgmr.msra.gmra.mrb[8].mxu1 %v2365_v48  ;;  %2706 = vmatpush3.bf16.msra.mxu0 %v3105_v52  ;;  %v3163_v48 = vld [vmem:[#allocation2 + $0x470] sm:$0xff]   ;;  %v3167_v52 = vld [vmem:[#allocation2 + $0x478] sm:$0xff]  }
  0x76   :  { %2728 = vmatpush3.bf16.msra.mxu1 %v3106_v53  ;;  %2707 = vmatprep.subr.bf16.mxu0 %v3107_v54  ;;  %v3168_v53 = vld [vmem:[#allocation2 + $0x4f8] sm:$0xff]  }
  0x77   :  { %2729 = vmatprep.subr.bf16.mxu1 %v3108_v55  ;;  %1952 = vmatprep.mubr.bf16.mxu0 %v2368_v21  ;;  %v3169_v54 = vld [vmem:[#allocation2 + $0x438] sm:$0xff]   ;;  %v3198_v21 = vld [vmem:[#allocation2 + $0x5a8] sm:$0xff]  }
  0x78   :  { %1992 = vmatprep.mubr.bf16.mxu1 %v2370_v24  ;;  %v3170_v55 = vld [vmem:[#allocation2 + $0x4b8] sm:$0xff]   ;;  %v3201_v24 = vld [vmem:[#allocation2 + $0x530] sm:$0xff]  }
  0x79   :  { %2708 = vmatpush3.bf16.msra.mxu0 %v3109_v56  ;;  %v49_v56 = vld [vmem:[%s3453_s0 + $0x40] sm:$0xff] }
  0x7a   :  { %2730 = vmatpush3.bf16.msra.mxu1 %v3110_v57  ;;  %2709 = vmatprep.subr.bf16.mxu0 %v3111_v58  ;;  %v2371_v57 = vcombine.low %v49_v56, %v49_v56  ;;  %v2372_v58 = vcombine.high %v49_v56, %v49_v56  ;;  %v2165_v56 = vld [vmem:[%s3456_s3 + $0x20] sm:$0xff] }
  0x7b   :  { %2731 = vmatprep.subr.bf16.mxu1 %v3112_v59  ;;  %v50_v59 = vld [vmem:[%s3453_s0 + $0x48] sm:$0xff] }
  0x7d   :  { %2710 = vmatpush3.bf16.msra.mxu0 %v3113_v60  ;;  %v2373_v60 = vcombine.low %v50_v59, %v50_v59 }
  0x7e   :  { %2732 = vmatpush3.bf16.msra.mxu1 %v3114_v61  ;;  %2711 = vmatprep.subr.bf16.mxu0 %v3115_v62  ;;  %v2374_v61 = vcombine.high %v50_v59, %v50_v59  ;;  %v3175_v62 = vld [vmem:[#allocation2 + $0x540] sm:$0xff]   ;;  %v2167_v59 = vld [vmem:[%s3456_s3 + $0x30] sm:$0xff] }
  0x7f   :  { %2733 = vmatprep.subr.bf16.mxu1 %v3116_v63  ;;  %v3176_v63 = vld [vmem:[#allocation2 + $0x5c0] sm:$0xff]  }
  0x81   :  { %2712 = vmatpush3.bf16.msra.mxu0 %v3117_v0  ;;  %v3177_v0 = vld [vmem:[#allocation2 + $0x500] sm:$0xff]  }
  0x82   :  { %2734 = vmatpush3.bf16.msra.mxu1 %v3118_v1  ;;  %2713 = vmatprep.subr.bf16.mxu0 %v3119_v2  ;;  %v3178_v1 = vld [vmem:[#allocation2 + $0x580] sm:$0xff]   ;;  %v3179_v2 = vld [vmem:[#allocation2 + $0x548] sm:$0xff]  }
  0x83   :  { %2735 = vmatprep.subr.bf16.mxu1 %v3120_v3  ;;  %v3180_v3 = vld [vmem:[#allocation2 + $0x5c8] sm:$0xff]  }
  0x85   :  { %2714 = vmatpush3.bf16.msra.mxu0 %v3121_v4  ;;  %v3181_v4 = vld [vmem:[#allocation2 + $0x508] sm:$0xff]  }
  0x86   :  { %2736 = vmatpush3.bf16.msra.mxu1 %v3122_v5  ;;  %2715 = vmatprep.subr.bf16.mxu0 %v3123_v6  ;;  %v3182_v5 = vld [vmem:[#allocation2 + $0x588] sm:$0xff]   ;;  %v3183_v6 = vld [vmem:[#allocation2 + $0x550] sm:$0xff]  }
  0x87   :  { %2737 = vmatprep.subr.bf16.mxu1 %v3124_v7  ;;  %v3184_v7 = vld [vmem:[#allocation2 + $0x5d0] sm:$0xff]  }
  0x89   :  { %2716 = vmatpush3.bf16.msra.mxu0 %v3125_v8  ;;  %v3185_v8 = vld [vmem:[#allocation2 + $0x510] sm:$0xff]  }
  0x8a   :  { %2738 = vmatpush3.bf16.msra.mxu1 %v3126_v9  ;;  %2717 = vmatprep.subr.bf16.mxu0 %v3127_v10  ;;  %v3186_v9 = vld [vmem:[#allocation2 + $0x590] sm:$0xff]   ;;  %v3187_v10 = vld [vmem:[#allocation2 + $0x558] sm:$0xff]  }
  0x8b   :  { %2739 = vmatprep.subr.bf16.mxu1 %v3128_v11  ;;  %v3188_v11 = vld [vmem:[#allocation2 + $0x5d8] sm:$0xff]  }
  0x8d   :  { %2718 = vmatpush3.bf16.msra.mxu0 %v3129_v12  ;;  %v3189_v12 = vld [vmem:[#allocation2 + $0x518] sm:$0xff]  }
  0x8e   :  { %2740 = vmatpush3.bf16.msra.mxu1 %v3130_v13  ;;  %2719 = vmatprep.subr.bf16.mxu0 %v3131_v14  ;;  %v3190_v13 = vld [vmem:[#allocation2 + $0x598] sm:$0xff]   ;;  %v3191_v14 = vld [vmem:[#allocation2 + $0x560] sm:$0xff]  }
  0x8f   :  { %2741 = vmatprep.subr.bf16.mxu1 %v3132_v15  ;;  %v3192_v15 = vld [vmem:[#allocation2 + $0x5e0] sm:$0xff]  }
  0x91   :  { %2720 = vmatpush3.bf16.msra.mxu0 %v3133_v16  ;;  %v3193_v16 = vld [vmem:[#allocation2 + $0x520] sm:$0xff]  }
  0x92   :  { %2742 = vmatpush3.bf16.msra.mxu1 %v3134_v17  ;;  %2749 = vmatprep.subr.bf16.mxu0 %v3139_v23  ;;  %v3194_v17 = vld [vmem:[#allocation2 + $0x5a0] sm:$0xff]   ;;  %v3200_v23 = vld [vmem:[#allocation2 + $0x5f0] sm:$0xff]  }
  0x93   :  { %2771 = vmatprep.subr.bf16.mxu1 %v3140_v25  ;;  %v3202_v25 = vld [vmem:[#allocation2 + $0x5b0] sm:$0xff]  }
  0x94   :  { %1953 = vmatmul.mubr.bf16.vlgmr.msra.gmra.mrb[12].mxu0 %v2367_v20  ;;  %v3197_v20 = vld [vmem:[#allocation2 + $0x528] sm:$0xff]  }
  0x95   :  { %1993 = vmatmul.mubr.bf16.vlgmr.msra.gmra.mrb[12].mxu1 %v2369_v22  ;;  %2750 = vmatpush3.bf16.msra.mxu0 %v3141_v26  ;;  %v3199_v22 = vld [vmem:[#allocation2 + $0x570] sm:$0xff]   ;;  %v3203_v26 = vld [vmem:[#allocation2 + $0x578] sm:$0xff]  }
  0x96   :  { %2772 = vmatpush3.bf16.msra.mxu1 %v3142_v27  ;;  %2751 = vmatprep.subr.bf16.mxu0 %v3143_v28  ;;  %v3204_v27 = vld [vmem:[#allocation2 + $0x5f8] sm:$0xff]  }
  0x97   :  { %2773 = vmatprep.subr.bf16.mxu1 %v3144_v29  ;;  %2032 = vmatprep.mubr.bf16.mxu0 %v2372_v58  ;;  %v3205_v28 = vld [vmem:[#allocation2 + $0x538] sm:$0xff]  }
  0x98   :  { %2072 = vmatprep.mubr.bf16.mxu1 %v2374_v61  ;;  %v3206_v29 = vld [vmem:[#allocation2 + $0x5b8] sm:$0xff]  }
  0x99   :  { %2752 = vmatpush3.bf16.msra.mxu0 %v3145_v30  ;;  %v51_v30 = vld [vmem:[%s3453_s0 + $0x50] sm:$0xff] }
  0x9a   :  { %2774 = vmatpush3.bf16.msra.mxu1 %v3146_v31  ;;  %2753 = vmatprep.subr.bf16.mxu0 %v3147_v32  ;;  %v52_v31 = vld [vmem:[%s3453_s0 + $0x58] sm:$0xff]  ;;  %v2375_v32 = vcombine.low %v51_v30, %v51_v30 }
  0x9b   :  { %2775 = vmatprep.subr.bf16.mxu1 %v3148_v33  ;;  %v2376_v33 = vcombine.high %v51_v30, %v51_v30  ;;  %v2260_v30 = vld [vmem:[%s3458_s5 + $0x28] sm:$0xff] }
  0x9d   :  { %2754 = vmatpush3.bf16.msra.mxu0 %v3149_v34  ;;  %v2377_v34 = vcombine.low %v52_v31, %v52_v31 }
  0x9e   :  { %2776 = vmatpush3.bf16.msra.mxu1 %v3150_v35  ;;  %2755 = vmatprep.subr.bf16.mxu0 %v3151_v36  ;;  %v2378_v35 = vcombine.high %v52_v31, %v52_v31 }
  0x9f   :  { %2777 = vmatprep.subr.bf16.mxu1 %v3152_v37 }
  0xa1   :  { %2756 = vmatpush3.bf16.msra.mxu0 %v3153_v38  ;;  %v2354_v38 = vld [vmem:[%s3455_s2] ss:$0 sm:$0xff] }
  0xa2   :  { %2778 = vmatpush3.bf16.msra.mxu1 %v3154_v39  ;;  %2757 = vmatprep.subr.bf16.mxu0 %v3155_v40 }
  0xa3   :  { %2779 = vmatprep.subr.bf16.mxu1 %v3156_v41 }
  0xa5   :  { %2758 = vmatpush3.bf16.msra.mxu0 %v3157_v42 }
  0xa6   :  { %2780 = vmatpush3.bf16.msra.mxu1 %v3158_v43  ;;  %2759 = vmatprep.subr.bf16.mxu0 %v3159_v44 }
  0xa7   :  { %2781 = vmatprep.subr.bf16.mxu1 %v3160_v45 }
  0xa9   :  { %2760 = vmatpush3.bf16.msra.mxu0 %v3161_v46 }
  0xaa   :  { %2782 = vmatpush3.bf16.msra.mxu1 %v3162_v47  ;;  %2761 = vmatprep.subr.bf16.mxu0 %v3163_v48 }
  0xab   :  { %2783 = vmatprep.subr.bf16.mxu1 %v3164_v49  ;;  %v2161_v49 = vld [vmem:[%s3456_s3] sm:$0xff] }
  0xad   :  { %2762 = vmatpush3.bf16.msra.mxu0 %v3165_v50  ;;  %v2162_v50 = vld [vmem:[%s3456_s3 + $0x8] sm:$0xff] }
  0xae   :  { %2784 = vmatpush3.bf16.msra.mxu1 %v3166_v51  ;;  %2763 = vmatprep.subr.bf16.mxu0 %v3167_v52  ;;  %v2163_v51 = vld [vmem:[%s3456_s3 + $0x10] sm:$0xff]  ;;  %v3238_v52 = vmov 0.0|0.0  }
  0xaf   :  { %2785 = vmatprep.subr.bf16.mxu1 %v3168_v53  ;;  %v2942_v53 = vpack.c.bf16 %v2162_v50, %v2161_v49 }
  0xb1   :  { %2764 = vmatpush3.bf16.msra.mxu0 %v3169_v54  ;;  %v2164_v54 = vld [vmem:[%s3456_s3 + $0x18] sm:$0xff] }
  0xb2   :  { %2786 = vmatpush3.bf16.msra.mxu1 %v3170_v55  ;;  %2793 = vmatprep.subr.bf16.mxu0 %v3175_v62  ;;  %v2945_v55 = vpack.c.bf16 %v2164_v54, %v2163_v51  ;;  %v2169_v62 = vld [vmem:[%s3456_s3 + $0x40] sm:$0xff] }
  0xb3   :  { %2815 = vmatprep.subr.bf16.mxu1 %v3176_v63  ;;  %v2170_v63 = vld [vmem:[%s3456_s3 + $0x48] sm:$0xff] }
  0xb4   :  { %2033 = vmatmul.mubr.bf16.vlgmr.msra.gmra.mrb[16].mxu0 %v2371_v57  ;;  %v2166_v57 = vld [vmem:[%s3456_s3 + $0x28] sm:$0xff] }
  0xb5   :  { %2073 = vmatmul.mubr.bf16.vlgmr.msra.gmra.mrb[16].mxu1 %v2373_v60  ;;  %2794 = vmatpush3.bf16.msra.mxu0 %v3177_v0  ;;  %v2948_v58 = vpack.c.bf16 %v2166_v57, %v2165_v56  ;;  %v2168_v60 = vld [vmem:[%s3456_s3 + $0x38] sm:$0xff]  ;;  %v2954_v0 = vpack.c.bf16 %v2170_v63, %v2169_v62 }
  0xb6   :  { %2816 = vmatpush3.bf16.msra.mxu1 %v3178_v1  ;;  %2795 = vmatprep.subr.bf16.mxu0 %v3179_v2  ;;  %v2951_v61 = vpack.c.bf16 %v2168_v60, %v2167_v59  ;;  %v2171_v1 = vld [vmem:[%s3456_s3 + $0x50] sm:$0xff]  ;;  %v2172_v2 = vld [vmem:[%s3456_s3 + $0x58] sm:$0xff] }
  0xb7   :  { %2817 = vmatprep.subr.bf16.mxu1 %v3180_v3  ;;  %2112 = vmatprep.mubr.bf16.mxu0 %v2376_v33  ;;  %v2957_v3 = vpack.c.bf16 %v2172_v2, %v2171_v1  ;;  %v2262_v33 = vld [vmem:[%s3458_s5 + $0x38] sm:$0xff] }
  0xb8   :  { %2152 = vmatprep.mubr.bf16.mxu1 %v2378_v35  ;;  %v2263_v35 = vld [vmem:[%s3458_s5 + $0x40] sm:$0xff] }
  0xb9   :  { %2796 = vmatpush3.bf16.msra.mxu0 %v3181_v4 }
  0xba   :  { %2818 = vmatpush3.bf16.msra.mxu1 %v3182_v5  ;;  %2797 = vmatprep.subr.bf16.mxu0 %v3183_v6 }
  0xbb   :  { %2819 = vmatprep.subr.bf16.mxu1 %v3184_v7 }
  0xbd   :  { %2798 = vmatpush3.bf16.msra.mxu0 %v3185_v8 }
  0xbe   :  { %2820 = vmatpush3.bf16.msra.mxu1 %v3186_v9  ;;  %2799 = vmatprep.subr.bf16.mxu0 %v3187_v10 }
  0xbf   :  { %2821 = vmatprep.subr.bf16.mxu1 %v3188_v11 }
  0xc1   :  { %2800 = vmatpush3.bf16.msra.mxu0 %v3189_v12 }
  0xc2   :  { %2822 = vmatpush3.bf16.msra.mxu1 %v3190_v13  ;;  %2801 = vmatprep.subr.bf16.mxu0 %v3191_v14  ;;  %v2173_v14 = vld [vmem:[%s3456_s3 + $0x60] sm:$0xff] }
  0xc3   :  { %2823 = vmatprep.subr.bf16.mxu1 %v3192_v15  ;;  %v2174_v15 = vld [vmem:[%s3456_s3 + $0x68] sm:$0xff] }
  0xc5   :  { %2802 = vmatpush3.bf16.msra.mxu0 %v3193_v16 }
  0xc6   :  { %2824 = vmatpush3.bf16.msra.mxu1 %v3194_v17  ;;  %2803 = vmatprep.subr.bf16.mxu0 %v3195_v18  ;;  %v2960_v17 = vpack.c.bf16 %v2174_v15, %v2173_v14 }
  0xc7   :  { %2825 = vmatprep.subr.bf16.mxu1 %v3196_v19  ;;  %v2175_v19 = vld [vmem:[%s3456_s3 + $0x70] sm:$0xff] }
  0xc9   :  { %2804 = vmatpush3.bf16.msra.mxu0 %v3197_v20  ;;  %v2176_v20 = vld [vmem:[%s3456_s3 + $0x78] sm:$0xff] }
  0xca   :  { %2826 = vmatpush3.bf16.msra.mxu1 %v3198_v21  ;;  %2805 = vmatprep.subr.bf16.mxu0 %v3199_v22  ;;  %v2963_v21 = vpack.c.bf16 %v2176_v20, %v2175_v19  ;;  %v3240_v22 = vmov 0.0  }
  0xcb   :  { %2827 = vmatprep.subr.bf16.mxu1 %v3200_v23  ;;  %v2255_v23 = vld [vmem:[%s3458_s5] sm:$0xff] }
  0xcd   :  { %2806 = vmatpush3.bf16.msra.mxu0 %v3201_v24  ;;  %v2256_v24 = vld [vmem:[%s3458_s5 + $0x8] sm:$0xff] }
  0xce   :  { %2828 = vmatpush3.bf16.msra.mxu1 %v3202_v25  ;;  %2807 = vmatprep.subr.bf16.mxu0 %v3203_v26  ;;  %v2257_v25 = vld [vmem:[%s3458_s5 + $0x10] sm:$0xff]  ;;  %v2966_v26 = vpack.c.bf16 %v2256_v24, %v2255_v23 }
  0xcf   :  { %2829 = vmatprep.subr.bf16.mxu1 %v3204_v27  ;;  %v2258_v27 = vld [vmem:[%s3458_s5 + $0x18] sm:$0xff] }
  0xd1   :  { %2808 = vmatpush3.bf16.msra.mxu0 %v3205_v28  ;;  %v2969_v28 = vpack.c.bf16 %v2258_v27, %v2257_v25 }
  0xd2   :  { %2830 = vmatpush3.bf16.msra.mxu1 %v3206_v29  ;;  %2941 = vmatprep.subr.bf16.mxu0 %v3238_v52  ;;  %v2259_v29 = vld [vmem:[%s3458_s5 + $0x20] sm:$0xff] }
  0xd3   :  { %2965 = vmatprep.subr.bf16.mxu1 %v3238_v52  ;;  %v2972_v31 = vpack.c.bf16 %v2260_v30, %v2259_v29  ;;  %v2269_v29 = vld [vmem:[%s3458_s5 + $0x70] sm:$0xff]  ;;  %v2270_v30 = vld [vmem:[%s3458_s5 + $0x78] sm:$0xff] }
  0xd4   :  { %2113 = vmatmul.mubr.bf16.vlgmr.msra.gmra.mrb[20].mxu0 %v2375_v32  ;;  %v2261_v32 = vld [vmem:[%s3458_s5 + $0x30] sm:$0xff] }
  0xd5   :  { %2153 = vmatmul.mubr.bf16.vlgmr.msra.gmra.mrb[20].mxu1 %v2377_v34  ;;  %2943 = vmatpush3.bf16.msra.mxu0 %v2942_v53  ;;  %v2975_v34 = vpack.c.bf16 %v2262_v33, %v2261_v32  ;;  %v2571_v32 = vld [vmem:[%s3457_s4] ss:$0 sm:$0xff] }
  0xd6   :  { %2944 = vmatprep.subr.bf16.mxu0 %v3238_v52  ;;  %2903 = vmatprep.mubr.msk.f32.mxu0 %vm3239_vm0, %v3240_v22 }
  0xd7   :  { %2938 = vmatprep.mubr.msk.f32.mxu1 %vm3239_vm0, %v3240_v22  ;;  %2967 = vmatpush3.bf16.msra.mxu1 %v2966_v26 }
  0xd8   :  { %2968 = vmatprep.subr.bf16.mxu1 %v3238_v52 }
  0xd9   :  { %2946 = vmatpush3.bf16.msra.mxu0 %v2945_v55 }
  0xda   :  { %2947 = vmatprep.subr.bf16.mxu0 %v3238_v52 }
  0xdb   :  { %2970 = vmatpush3.bf16.msra.mxu1 %v2969_v28 }
  0xdc   :  { %2971 = vmatprep.subr.bf16.mxu1 %v3238_v52 }
  0xdd   :  { %2949 = vmatpush3.bf16.msra.mxu0 %v2948_v58 }
  0xde   :  { %2950 = vmatprep.subr.bf16.mxu0 %v3238_v52 }
  0xdf   :  { %2973 = vmatpush3.bf16.msra.mxu1 %v2972_v31  ;;  %v2987_v31 = vpack.c.bf16 %v2270_v30, %v2269_v29 }
  0xe0   :  { %2974 = vmatprep.subr.bf16.mxu1 %v3238_v52 }
  0xe1   :  { %2952 = vmatpush3.bf16.msra.mxu0 %v2951_v61 }
  0xe2   :  { %2953 = vmatprep.subr.bf16.mxu0 %v3238_v52 }
  0xe3   :  { %2976 = vmatpush3.bf16.msra.mxu1 %v2975_v34 }
  0xe4   :  { %2977 = vmatprep.subr.bf16.mxu1 %v3238_v52 }
  0xe5   :  { %2955 = vmatpush3.bf16.msra.mxu0 %v2954_v0 }
  0xe6   :  { %2956 = vmatprep.subr.bf16.mxu0 %v3238_v52 }
  0xe9   :  { %2958 = vmatpush3.bf16.msra.mxu0 %v2957_v3 }
  0xea   :  { %2959 = vmatprep.subr.bf16.mxu0 %v3238_v52 }
  0xed   :  { %2961 = vmatpush3.bf16.msra.mxu0 %v2960_v17 }
  0xee   :  { %2962 = vmatprep.subr.bf16.mxu0 %v3238_v52 }
  0xf1   :  { %2964 = vmatpush3.bf16.msra.mxu0 %v2963_v21 }
 0x107   :  { %v2589_v36 = vpop.f32.mrb[0].mxu0 }
 0x108   :  { %v2611_v37 = vpop.f32.mrb[0].mxu1  ;;  %v2590_v39 = vpop.f32.mrb[1].mxu0 }
 0x109   :  { %v2612_v40 = vpop.f32.mrb[1].mxu1  ;;  %v2591_v41 = vadd.f32 %v2590_v39, %v2589_v36  ;;  %v2592_v43 = vpop.f32.mrb[2].mxu0  ;;  %v2264_v36 = vld [vmem:[%s3458_s5 + $0x48] sm:$0xff]  ;;  %v2266_v39 = vld [vmem:[%s3458_s5 + $0x58] sm:$0xff] }
 0x10a   :  { %v2613_v42 = vadd.f32 %v2612_v40, %v2611_v37  ;;  %v2614_v44 = vpop.f32.mrb[2].mxu1  ;;  %v2593_v45 = vpop.f32.mrb[3].mxu0  ;;  %v2978_v37 = vpack.c.bf16 %v2264_v36, %v2263_v35  ;;  %v2268_v43 = vld [vmem:[%s3458_s5 + $0x68] sm:$0xff] }
 0x10b   :  { %v2615_v46 = vpop.f32.mrb[3].mxu1  ;;  %v1715_v47 = vadd.f32 %v2591_v41, %v2354_v38  ;;  %v2265_v38 = vld [vmem:[%s3458_s5 + $0x50] sm:$0xff] }
 0x10c   :  { %2979 = vmatpush3.bf16.msra.mxu1 %v2978_v37  ;;  %v2981_v40 = vpack.c.bf16 %v2266_v39, %v2265_v38  ;;  %v2572_v37 = vld [vmem:[%s3459_s6] ss:$0 sm:$0xff] }
 0x10d   :  { %v1755_v48 = vadd.f32 %v2613_v42, %v1715_v47  ;;  %2980 = vmatprep.subr.bf16.mxu1 %v3238_v52  ;;  %v2267_v42 = vld [vmem:[%s3458_s5 + $0x60] sm:$0xff] }
 0x10e   :  { %v2984_v53 = vpack.c.bf16 %v2268_v43, %v2267_v42 }
 0x110   :  { %2982 = vmatpush3.bf16.msra.mxu1 %v2981_v40 }
 0x111   :  { %2983 = vmatprep.subr.bf16.mxu1 %v3238_v52 }
 0x114   :  { %2985 = vmatpush3.bf16.msra.mxu1 %v2984_v53 }
 0x115   :  { %2986 = vmatprep.subr.bf16.mxu1 %v3238_v52 }
 0x118   :  { %2988 = vmatpush3.bf16.msra.mxu1 %v2987_v31 }
 0x127   :  { %v2633_v4 = vpop.f32.mrb[4].mxu0 }
 0x128   :  { %v2655_v5 = vpop.f32.mrb[4].mxu1  ;;  %v2634_v6 = vpop.f32.mrb[5].mxu0 }
 0x129   :  { %v2656_v7 = vpop.f32.mrb[5].mxu1  ;;  %v2635_v8 = vadd.f32 %v2634_v6, %v2633_v4  ;;  %v2636_v10 = vpop.f32.mrb[6].mxu0 }
 0x12a   :  { %v2657_v9 = vadd.f32 %v2656_v7, %v2655_v5  ;;  %v2658_v11 = vpop.f32.mrb[6].mxu1  ;;  %v2637_v12 = vpop.f32.mrb[7].mxu0 }
 0x12b   :  { %v2659_v13 = vpop.f32.mrb[7].mxu1  ;;  %v1795_v16 = vadd.f32 %v2635_v8, %v1755_v48 }
 0x12d   :  { %v1835_v18 = vadd.f32 %v2657_v9, %v1795_v16 }
 0x147   :  { %v2677_v41 = vpop.f32.mrb[8].mxu0 }
 0x148   :  { %v2699_v44 = vpop.f32.mrb[8].mxu1  ;;  %v2678_v45 = vpop.f32.mrb[9].mxu0 }
 0x149   :  { %v2679_v46 = vadd.f32 %v2678_v45, %v2677_v41  ;;  %v2700_v47 = vpop.f32.mrb[9].mxu1  ;;  %v2680_v48 = vpop.f32.mrb[10].mxu0 }
 0x14a   :  { %v2701_v49 = vadd.f32 %v2700_v47, %v2699_v44  ;;  %v2702_v50 = vpop.f32.mrb[10].mxu1  ;;  %v2681_v51 = vpop.f32.mrb[11].mxu0 }
 0x14b   :  { %v1875_v54 = vadd.f32 %v2679_v46, %v1835_v18  ;;  %v2703_v55 = vpop.f32.mrb[11].mxu1 }
 0x14d   :  { %v1915_v56 = vadd.f32 %v2701_v49, %v1875_v54 }
 0x167   :  { %v2721_v57 = vpop.f32.mrb[12].mxu0 }
 0x168   :  { %v2743_v58 = vpop.f32.mrb[12].mxu1  ;;  %v2722_v59 = vpop.f32.mrb[13].mxu0 }
 0x169   :  { %v2723_v60 = vadd.f32 %v2722_v59, %v2721_v57  ;;  %v2744_v61 = vpop.f32.mrb[13].mxu1  ;;  %v2724_v62 = vpop.f32.mrb[14].mxu0 }
 0x16a   :  { %v2745_v63 = vadd.f32 %v2744_v61, %v2743_v58  ;;  %v2746_v0 = vpop.f32.mrb[14].mxu1  ;;  %v2725_v1 = vpop.f32.mrb[15].mxu0 }
 0x16b   :  { %v1955_v2 = vadd.f32 %v2723_v60, %v1915_v56  ;;  %v2747_v3 = vpop.f32.mrb[15].mxu1 }
 0x16d   :  { %v1995_v4 = vadd.f32 %v2745_v63, %v1955_v2 }
 0x187   :  { %v2765_v5 = vpop.f32.mrb[16].mxu0 }
 0x188   :  { %v2787_v6 = vpop.f32.mrb[16].mxu1  ;;  %v2766_v7 = vpop.f32.mrb[17].mxu0 }
 0x189   :  { %v2788_v8 = vpop.f32.mrb[17].mxu1  ;;  %v2767_v9 = vadd.f32 %v2766_v7, %v2765_v5  ;;  %v2768_v11 = vpop.f32.mrb[18].mxu0 }
 0x18a   :  { %v2789_v10 = vadd.f32 %v2788_v8, %v2787_v6  ;;  %v2790_v52 = vpop.f32.mrb[18].mxu1  ;;  %v2769_v12 = vpop.f32.mrb[19].mxu0 }
 0x18b   :  { %v2791_v13 = vpop.f32.mrb[19].mxu1  ;;  %v2035_v14 = vadd.f32 %v2767_v9, %v1995_v4 }
 0x18d   :  { %v2075_v15 = vadd.f32 %v2789_v10, %v2035_v14 }
 0x1a7   :  { %v2809_v16 = vpop.f32.mrb[20].mxu0 }
 0x1a8   :  { %v2831_v17 = vpop.f32.mrb[20].mxu1  ;;  %v2810_v18 = vpop.f32.mrb[21].mxu0 }
 0x1a9   :  { %v2811_v19 = vadd.f32 %v2810_v18, %v2809_v16  ;;  %v2832_v20 = vpop.f32.mrb[21].mxu1  ;;  %v2812_v21 = vpop.f32.mrb[22].mxu0 }
 0x1aa   :  { %v2833_v22 = vadd.f32 %v2832_v20, %v2831_v17  ;;  %v2834_v23 = vpop.f32.mrb[22].mxu1  ;;  %v2813_v24 = vpop.f32.mrb[23].mxu0 }
 0x1ab   :  { %v2115_v25 = vadd.f32 %v2811_v19, %v2075_v15  ;;  %v2835_v26 = vpop.f32.mrb[23].mxu1 }
 0x1ad   :  { %v2155_v27 = vadd.f32 %v2833_v22, %v2115_v25 }
 0x1af   :  { %v2160_v28 = vmax.f32 %v2155_v27, 0.0 }
 0x1b1   :  { %2904 = vmatmul.mubr.f32.vlgmr.msra.gmra.mrb[24].mxu0 %v2160_v28 }
 0x284   :  { %v2250_v33 = vpop.f32.mrb[24].mxu0 }
 0x285   :  { %v2251_v34 = vadd.f32 %v2571_v32, %v2250_v33  ;;  %v2905_v35 = vpop.f32.mrb[25].mxu0 }
 0x287   :  { %v2254_v36 = vmax.f32 %v2251_v34, 0.0 }
 0x289   :  { %2939 = vmatmul.mubr.f32.vlgmr.msra.gmra.mrb[24].mxu1 %v2254_v36 }
 0x35c   :  { %v2344_v38 = vpop.f32.mrb[24].mxu1 }
 0x35d   :  { %v2345_v39 = vadd.f32 %v2572_v37, %v2344_v38  ;;  %v2940_v40 = vpop.f32.mrb[25].mxu1 }
 0x35f   :  { %2348 = vst [vmem:[%s3460_s7] sm:$0xff] %v2345_v39 }
 0x360   :  { %2353 = vsyncpa [#allocation3], 1 }

</bundles_post_ra>
